<compile_context>
chip_gen: v6e
topology: v6e:2x2x1
jax: 0.10.0
libtpu: 0.0.40
codegen_flags: <defaults>
</compile_context>

<pallas_src>
import functools

import jax
import jax.numpy as jnp
import numpy as np
from jax.experimental import pallas as pl
from jax.experimental.pallas import tpu as pltpu

EPS = 1e-5
NEG_SLOPE = 0.01          # torch.nn.functional.leaky_relu default
LANE = 128


def _disc_block_kernel(p_ref, w_ref, params_ref, o_ref, *, m_real):
    # p_ref:      (B_TILE, R, Kc)     bf16  im2col patches for B_TILE samples
    # w_ref:      (Kc, C_pad)         bf16  weight, zero-padded channels
    # params_ref: (3, C_pad)          f32   rows = [bias, gamma, beta], zero-padded
    # o_ref:      (B_TILE, R, C_pad)  f32
    w = w_ref[...]
    params = params_ref[...]
    bias = params[0:1, :]       # (1, C_pad)
    gamma = params[1:2, :]
    beta = params[2:3, :]

    b_tile = p_ref.shape[0]
    inv_m = 1.0 / m_real
    inv_m1 = 1.0 / (m_real - 1.0)

    for i in range(b_tile):  # static unroll; B_TILE is small
        # Conv as an MXU matmul: bf16 operands, f32 accumulation.
        conv = jnp.dot(p_ref[i], w, preferred_element_type=jnp.float32) + bias  # (R, C_pad)

        # Per-sample LayerNorm stats in a single pass. Padded channels are exactly
        # zero (zero weights + zero bias), so full-block sums == real-channel sums.
        s1 = jnp.sum(conv, axis=(0, 1), keepdims=True)          # (1, 1)
        s2 = jnp.sum(conv * conv, axis=(0, 1), keepdims=True)   # (1, 1)
        mean = s1 * inv_m
        var = (s2 - s1 * mean) * inv_m1                          # unbiased (Bessel)
        inv = pl.reciprocal(jnp.sqrt(var) + EPS, approx=True)    # 1/(std+eps), EUP

        scale = gamma * inv                                      # (1, C_pad)
        shift = beta - mean * scale                              # (1, C_pad)
        y = conv * scale + shift                                 # (x-mean)/(std+eps)*g+b
        y = jnp.where(y > 0, y, NEG_SLOPE * y)                   # LeakyReLU
        o_ref[i] = y.astype(o_ref.dtype)


@functools.partial(jax.jit, static_argnames=("kernel", "stride"))
def discriminator_block(x, w, b, gamma, beta, *, kernel, stride):
    """x: (N, C_in, H, W) f32. Conv2d(kernel, stride, VALID) -> per-sample LayerNorm
    (unbiased std, /(std+eps)) -> per-channel affine -> LeakyReLU.
    Returns (N, C_out, OH, OW) f32 (NCHW, matching the PyTorch module)."""
    N, C_in, H, W = x.shape
    C_out = w.shape[0]
    K, S = kernel, stride
    OH = (H - K) // S + 1
    OW = (W - K) // S + 1
    R = OH * OW
    Kc = C_in * K * K

    # im2col in one HLO op. Channel ordering is input-channel-major (C_in, KH, KW),
    # matching PyTorch's (C_out, C_in, KH, KW) weight flattening.
    pat = jax.lax.conv_general_dilated_patches(
        x, filter_shape=(K, K), window_strides=(S, S), padding="VALID",
        dimension_numbers=("NCHW", "OIHW", "NCHW"))              # (N, Kc, OH, OW)
    patches = jnp.transpose(pat, (0, 2, 3, 1)).reshape(N, R, Kc).astype(jnp.bfloat16)

    # Pad channels to a lane-dense multiple of 128 (padded channels all-zero).
    C_pad = max(LANE, ((C_out + LANE - 1) // LANE) * LANE)
    w_mat = jnp.zeros((Kc, C_pad), jnp.bfloat16)
    w_mat = w_mat.at[:, :C_out].set(w.reshape(C_out, Kc).T.astype(jnp.bfloat16))
    params = jnp.zeros((3, C_pad), jnp.float32)
    params = params.at[0, :C_out].set(b.astype(jnp.float32))
    params = params.at[1, :C_out].set(gamma.astype(jnp.float32))
    params = params.at[2, :C_out].set(beta.astype(jnp.float32))

    # Several samples per grid step; pad batch if needed (padded samples are cropped).
    B_TILE = min(N, 8)
    N_pad = ((N + B_TILE - 1) // B_TILE) * B_TILE
    if N_pad != N:
        patches = jnp.pad(patches, ((0, N_pad - N), (0, 0), (0, 0)))

    kernel_fn = functools.partial(_disc_block_kernel, m_real=float(R * C_out))

    out = pl.pallas_call(
        kernel_fn,
        out_shape=jax.ShapeDtypeStruct((N_pad, R, C_pad), jnp.float32),
        grid_spec=pltpu.PrefetchScalarGridSpec(
            num_scalar_prefetch=0,
            grid=(N_pad // B_TILE,),
            in_specs=[
                pl.BlockSpec((B_TILE, R, Kc), lambda n: (n, 0, 0)),
                pl.BlockSpec((Kc, C_pad), lambda n: (0, 0)),
                pl.BlockSpec((3, C_pad), lambda n: (0, 0)),
            ],
            out_specs=pl.BlockSpec((B_TILE, R, C_pad), lambda n: (n, 0, 0)),
        ),
        compiler_params=pltpu.CompilerParams(
            dimension_semantics=("parallel",),      # batch axis -> megacore on v7x
            vmem_limit_bytes=48 * 1024 * 1024,      # safe on v5e/v6e/v7x
        ),
    )(patches, w_mat, params)

    # Crop channel / batch padding; back to NCHW to match the PyTorch module.
    # (If the consumer can take NHWC, return `out[:N, :, :C_out]` reshaped instead
    #  and skip this transpose.)
    out = out[:N, :, :C_out]
    return out.reshape(N, OH, OW, C_out).transpose(0, 3, 1, 2)


def _reference(x, w, b, gamma, beta, kernel, stride):
    # Pure-JAX reference mirroring the PyTorch module semantics.
    conv = jax.lax.conv_general_dilated(
        x, w, window_strides=(stride, stride), padding="VALID",
        dimension_numbers=("NCHW", "OIHW", "NCHW"),
    ) + b.reshape(1, -1, 1, 1)
    N = conv.shape[0]
    flat = conv.reshape(N, -1)
    mean = flat.mean(axis=1).reshape(N, 1, 1, 1)
    std = jnp.sqrt(jnp.sum((flat - flat.mean(axis=1, keepdims=True)) ** 2, axis=1)
                   / (flat.shape[1] - 1)).reshape(N, 1, 1, 1)
    y = (conv - mean) / (std + EPS)
    y = gamma.reshape(1, -1, 1, 1) * y + beta.reshape(1, -1, 1, 1)
    return jnp.where(y > 0, y, NEG_SLOPE * y)


if __name__ == "__main__":
    key = jax.random.PRNGKey(0)
    k_x, k_w, k_b, k_g = jax.random.split(key, 4)

    # Small shapes: batch=2, in_dim=4, out_dim=8, spatial=16, kernel=3, stride=2
    N, C_in, H, W = 2, 4, 16, 16
    C_out, K, S = 8, 3, 2

    x = jax.random.normal(k_x, (N, C_in, H, W), dtype=jnp.float32)
    fan_in = C_in * K * K
    bound = 1.0 / np.sqrt(fan_in)
    w = jax.random.uniform(k_w, (C_out, C_in, K, K), jnp.float32, -bound, bound)
    b = jax.random.uniform(k_b, (C_out,), jnp.float32, -bound, bound)
    gamma = jax.random.uniform(k_g, (C_out,), jnp.float32, 0.0, 1.0)
    beta = jnp.zeros((C_out,), jnp.float32)

    out = discriminator_block(x, w, b, gamma, beta, kernel=K, stride=S)
    out = jax.block_until_ready(out)

    ref = jax.block_until_ready(_reference(x, w, b, gamma, beta, K, S))
    assert out.shape == ref.shape == (N, C_out, (H - K) // S + 1, (W - K) // S + 1)
    # bf16 matmul operands + approx reciprocal -> slightly wider tolerance than f32.
    np.testing.assert_allclose(np.asarray(out), np.asarray(ref), rtol=2e-2, atol=2e-2)

    print("KERNEL_OK")
</pallas_src>

<mosaic_0001>
module attributes {stable_mosaic.version = 11 : i64} {
  func.func @_disc_block_kernel(%arg0: i32, %arg1: memref<2x49x36xbf16, #tpu.memory_space<vmem>>, %arg2: memref<36x128xbf16, #tpu.memory_space<vmem>>, %arg3: memref<3x128xf32, #tpu.memory_space<vmem>>, %arg4: memref<2x49x128xf32, #tpu.memory_space<vmem>>) attributes {dimension_semantics = [#tpu.dimension_semantics<parallel>], iteration_bounds = array<i64: 1>, scalar_prefetch = 0 : i64, scratch_operands = 0 : i64, tpu.core_type = #tpu.core_type<tc>, window_params = [{transform_indices = @transform_0, window_bounds = array<i64: 2, 49, 36>}, {pipeline_mode = #tpu.pipeline_mode<synchronous>, transform_indices = @transform_1, window_bounds = array<i64: 36, 128>}, {pipeline_mode = #tpu.pipeline_mode<synchronous>, transform_indices = @transform_2, window_bounds = array<i64: 3, 128>}, {transform_indices = @transform_3, window_bounds = array<i64: 2, 49, 128>}]} {
    %c0 = arith.constant 0 : index
    %c0_0 = arith.constant 0 : index
    %0 = vector.load %arg2[%c0, %c0_0] : memref<36x128xbf16, #tpu.memory_space<vmem>>, vector<36x128xbf16>
    %c0_1 = arith.constant 0 : index
    %c0_2 = arith.constant 0 : index
    %1 = vector.load %arg3[%c0_1, %c0_2] : memref<3x128xf32, #tpu.memory_space<vmem>>, vector<3x128xf32>
    %2 = vector.extract_strided_slice %1 {offsets = [0, 0], sizes = [1, 128], strides = [1, 1]} : vector<3x128xf32> to vector<1x128xf32>
    %3 = vector.extract_strided_slice %1 {offsets = [1, 0], sizes = [1, 128], strides = [1, 1]} : vector<3x128xf32> to vector<1x128xf32>
    %4 = vector.extract_strided_slice %1 {offsets = [2, 0], sizes = [1, 128], strides = [1, 1]} : vector<3x128xf32> to vector<1x128xf32>
    %c0_3 = arith.constant 0 : index
    %c0_4 = arith.constant 0 : index
    %c0_5 = arith.constant 0 : index
    %5 = vector.load %arg1[%c0_3, %c0_4, %c0_5] : memref<2x49x36xbf16, #tpu.memory_space<vmem>>, vector<1x49x36xbf16>
    %6 = vector.shape_cast %5 : vector<1x49x36xbf16> to vector<49x36xbf16>
    %cst = arith.constant dense<0.000000e+00> : vector<49x128xf32>
    %7 = tpu.matmul %6, %0, %cst {dimension_numbers = #tpu.dot_dimension_numbers<[1], [0], [0], [1], [0, 0, 1, 1], [], []>} : vector<49x36xbf16>, vector<36x128xbf16>, vector<49x128xf32> -> vector<49x128xf32>
    %8 = vector.broadcast %2 : vector<1x128xf32> to vector<49x128xf32>
    %9 = arith.addf %7, %8 : vector<49x128xf32>
    %10 = vector.shape_cast %9 : vector<49x128xf32> to vector<1x49x128xf32>
    %cst_6 = arith.constant dense<0.000000e+00> : vector<1xf32>
    %11 = vector.multi_reduction <add>, %10, %cst_6 [1, 2] : vector<1x49x128xf32> to vector<1xf32>
    %12 = vector.shape_cast %11 : vector<1xf32> to vector<1x1x1xf32>
    %13 = vector.extract %12[0, 0, 0] : f32 from vector<1x1x1xf32>
    %14 = vector.broadcast %13 : f32 to vector<1x1xf32>
    %15 = arith.mulf %9, %9 : vector<49x128xf32>
    %16 = vector.shape_cast %15 : vector<49x128xf32> to vector<1x49x128xf32>
    %cst_7 = arith.constant dense<0.000000e+00> : vector<1xf32>
    %17 = vector.multi_reduction <add>, %16, %cst_7 [1, 2] : vector<1x49x128xf32> to vector<1xf32>
    %18 = vector.shape_cast %17 : vector<1xf32> to vector<1x1x1xf32>
    %19 = vector.extract %18[0, 0, 0] : f32 from vector<1x1x1xf32>
    %20 = vector.broadcast %19 : f32 to vector<1x1xf32>
    %cst_8 = arith.constant 0.00255102036 : f32
    %21 = vector.broadcast %cst_8 : f32 to vector<1x1xf32>
    %22 = arith.mulf %14, %21 : vector<1x1xf32>
    %23 = arith.mulf %14, %22 : vector<1x1xf32>
    %24 = arith.subf %20, %23 : vector<1x1xf32>
    %cst_9 = arith.constant 0.00255754474 : f32
    %25 = vector.broadcast %cst_9 : f32 to vector<1x1xf32>
    %26 = arith.mulf %24, %25 : vector<1x1xf32>
    %27 = math.sqrt %26 : vector<1x1xf32>
    %cst_10 = arith.constant 9.99999974E-6 : f32
    %28 = vector.broadcast %cst_10 : f32 to vector<1x1xf32>
    %29 = arith.addf %27, %28 : vector<1x1xf32>
    %30 = tpu.reciprocal %29 {approx = true} : vector<1x1xf32> -> vector<1x1xf32>
    %31 = vector.broadcast %30 : vector<1x1xf32> to vector<1x128xf32>
    %32 = arith.mulf %3, %31 : vector<1x128xf32>
    %33 = vector.broadcast %22 : vector<1x1xf32> to vector<1x128xf32>
    %34 = arith.mulf %33, %32 : vector<1x128xf32>
    %35 = arith.subf %4, %34 : vector<1x128xf32>
    %36 = vector.broadcast %32 : vector<1x128xf32> to vector<49x128xf32>
    %37 = arith.mulf %9, %36 : vector<49x128xf32>
    %38 = vector.broadcast %35 : vector<1x128xf32> to vector<49x128xf32>
    %39 = arith.addf %37, %38 : vector<49x128xf32>
    %cst_11 = arith.constant 0.000000e+00 : f32
    %40 = vector.broadcast %cst_11 : f32 to vector<49x128xf32>
    %41 = arith.cmpf ogt, %39, %40 : vector<49x128xf32>
    %cst_12 = arith.constant 0.00999999977 : f32
    %42 = vector.broadcast %cst_12 : f32 to vector<49x128xf32>
    %43 = arith.mulf %42, %39 : vector<49x128xf32>
    %44 = arith.select %41, %39, %43 : vector<49x128xi1>, vector<49x128xf32>
    %c0_13 = arith.constant 0 : index
    %c0_14 = arith.constant 0 : index
    %c0_15 = arith.constant 0 : index
    %45 = vector.load %arg4[%c0_13, %c0_14, %c0_15] : memref<2x49x128xf32, #tpu.memory_space<vmem>>, vector<1x49x128xf32>
    %46 = vector.shape_cast %45 : vector<1x49x128xf32> to vector<49x128xf32>
    %47 = vector.shape_cast %44 : vector<49x128xf32> to vector<1x49x128xf32>
    tpu.vector_store %arg4[%c0_13, %c0_14, %c0_15], %47 {strides = array<i32>} : memref<2x49x128xf32, #tpu.memory_space<vmem>>, vector<1x49x128xf32>,
    %c1 = arith.constant 1 : index
    %c0_16 = arith.constant 0 : index
    %c0_17 = arith.constant 0 : index
    %48 = vector.load %arg1[%c1, %c0_16, %c0_17] : memref<2x49x36xbf16, #tpu.memory_space<vmem>>, vector<1x49x36xbf16>
    %49 = vector.shape_cast %48 : vector<1x49x36xbf16> to vector<49x36xbf16>
    %cst_18 = arith.constant dense<0.000000e+00> : vector<49x128xf32>
    %50 = tpu.matmul %49, %0, %cst_18 {dimension_numbers = #tpu.dot_dimension_numbers<[1], [0], [0], [1], [0, 0, 1, 1], [], []>} : vector<49x36xbf16>, vector<36x128xbf16>, vector<49x128xf32> -> vector<49x128xf32>
    %51 = vector.broadcast %2 : vector<1x128xf32> to vector<49x128xf32>
    %52 = arith.addf %50, %51 : vector<49x128xf32>
    %53 = vector.shape_cast %52 : vector<49x128xf32> to vector<1x49x128xf32>
    %cst_19 = arith.constant dense<0.000000e+00> : vector<1xf32>
    %54 = vector.multi_reduction <add>, %53, %cst_19 [1, 2] : vector<1x49x128xf32> to vector<1xf32>
    %55 = vector.shape_cast %54 : vector<1xf32> to vector<1x1x1xf32>
    %56 = vector.extract %55[0, 0, 0] : f32 from vector<1x1x1xf32>
    %57 = vector.broadcast %56 : f32 to vector<1x1xf32>
    %58 = arith.mulf %52, %52 : vector<49x128xf32>
    %59 = vector.shape_cast %58 : vector<49x128xf32> to vector<1x49x128xf32>
    %cst_20 = arith.constant dense<0.000000e+00> : vector<1xf32>
    %60 = vector.multi_reduction <add>, %59, %cst_20 [1, 2] : vector<1x49x128xf32> to vector<1xf32>
    %61 = vector.shape_cast %60 : vector<1xf32> to vector<1x1x1xf32>
    %62 = vector.extract %61[0, 0, 0] : f32 from vector<1x1x1xf32>
    %63 = vector.broadcast %62 : f32 to vector<1x1xf32>
    %cst_21 = arith.constant 0.00255102036 : f32
    %64 = vector.broadcast %cst_21 : f32 to vector<1x1xf32>
    %65 = arith.mulf %57, %64 : vector<1x1xf32>
    %66 = arith.mulf %57, %65 : vector<1x1xf32>
    %67 = arith.subf %63, %66 : vector<1x1xf32>
    %cst_22 = arith.constant 0.00255754474 : f32
    %68 = vector.broadcast %cst_22 : f32 to vector<1x1xf32>
    %69 = arith.mulf %67, %68 : vector<1x1xf32>
    %70 = math.sqrt %69 : vector<1x1xf32>
    %cst_23 = arith.constant 9.99999974E-6 : f32
    %71 = vector.broadcast %cst_23 : f32 to vector<1x1xf32>
    %72 = arith.addf %70, %71 : vector<1x1xf32>
    %73 = tpu.reciprocal %72 {approx = true} : vector<1x1xf32> -> vector<1x1xf32>
    %74 = vector.broadcast %73 : vector<1x1xf32> to vector<1x128xf32>
    %75 = arith.mulf %3, %74 : vector<1x128xf32>
    %76 = vector.broadcast %65 : vector<1x1xf32> to vector<1x128xf32>
    %77 = arith.mulf %76, %75 : vector<1x128xf32>
    %78 = arith.subf %4, %77 : vector<1x128xf32>
    %79 = vector.broadcast %75 : vector<1x128xf32> to vector<49x128xf32>
    %80 = arith.mulf %52, %79 : vector<49x128xf32>
    %81 = vector.broadcast %78 : vector<1x128xf32> to vector<49x128xf32>
    %82 = arith.addf %80, %81 : vector<49x128xf32>
    %cst_24 = arith.constant 0.000000e+00 : f32
    %83 = vector.broadcast %cst_24 : f32 to vector<49x128xf32>
    %84 = arith.cmpf ogt, %82, %83 : vector<49x128xf32>
    %cst_25 = arith.constant 0.00999999977 : f32
    %85 = vector.broadcast %cst_25 : f32 to vector<49x128xf32>
    %86 = arith.mulf %85, %82 : vector<49x128xf32>
    %87 = arith.select %84, %82, %86 : vector<49x128xi1>, vector<49x128xf32>
    %c1_26 = arith.constant 1 : index
    %c0_27 = arith.constant 0 : index
    %c0_28 = arith.constant 0 : index
    %88 = vector.load %arg4[%c1_26, %c0_27, %c0_28] : memref<2x49x128xf32, #tpu.memory_space<vmem>>, vector<1x49x128xf32>
    %89 = vector.shape_cast %88 : vector<1x49x128xf32> to vector<49x128xf32>
    %90 = vector.shape_cast %87 : vector<49x128xf32> to vector<1x49x128xf32>
    tpu.vector_store %arg4[%c1_26, %c0_27, %c0_28], %90 {strides = array<i32>} : memref<2x49x128xf32, #tpu.memory_space<vmem>>, vector<1x49x128xf32>,
    return
  }
  func.func @transform_0(%arg0: i32) -> (i32, i32, i32) {
    %c0_i32 = arith.constant 0 : i32
    %c0_i32_0 = arith.constant 0 : i32
    %c0_i32_1 = arith.constant 0 : i32
    return %arg0, %c0_i32, %c0_i32_0 : i32, i32, i32
  }
  func.func @transform_1(%arg0: i32) -> (i32, i32) {
    %c0_i32 = arith.constant 0 : i32
    %c0_i32_0 = arith.constant 0 : i32
    %c0_i32_1 = arith.constant 0 : i32
    return %c0_i32, %c0_i32_0 : i32, i32
  }
  func.func @transform_2(%arg0: i32) -> (i32, i32) {
    %c0_i32 = arith.constant 0 : i32
    %c0_i32_0 = arith.constant 0 : i32
    %c0_i32_1 = arith.constant 0 : i32
    return %c0_i32, %c0_i32_0 : i32, i32
  }
  func.func @transform_3(%arg0: i32) -> (i32, i32, i32) {
    %c0_i32 = arith.constant 0 : i32
    %c0_i32_0 = arith.constant 0 : i32
    %c0_i32_1 = arith.constant 0 : i32
    return %arg0, %c0_i32, %c0_i32_0 : i32, i32, i32
  }
}

</mosaic_0001>

<bundles_post_ra>
// kernel: discriminator_block.1
= control target key start
LH: loop header
LB: loop body
LE: loop exit
PB: predicated region body
PF: predicated region fallthrough
CT: control target
= control target key end

     0   :  { %vm78_vm0 = vcmask 1041408   ;;  %vm65_vm1 = vcmask 293888   ;;  %v28_v12 = vlaneseq  ;;  %vm151_vm2 = vcmask 1040384   ;;  %s791_s1 = inlined_call_operand.vmem [shape: bf16[36,128], index: 1, kind: input, shape index: {}]   ;;  %s792_s0 = inlined_call_operand.vmem [shape: bf16[2,49,36], index: 0, kind: input, shape index: {}]   ;;  %s793_s2 = inlined_call_operand.vmem [shape: f32[3,128], index: 2, kind: input, shape index: {}]   ;;  %s794_s3 = inlined_call_operand.vmem [shape: f32[2,49,128], index: 3, kind: output, shape index: {}]  }
   0x1   :  { %v559_v0 = vld [vmem:[%s791_s1 + $0x10] ss:$0 sps:$4 sm:$0x33]   ;;  %v560_v1 = vld [vmem:[%s791_s1 + $0x8] sm:$0xff]   ;;  %v561_v3 = vld [vmem:[%s791_s1] sm:$0xff]  }
   0x2   :  { %549 = vmatprep.subr.msk.bf16.mxu0 %vm78_vm0, %v559_v0  ;;  %550 = vmatprep.subr.msk.bf16.mxu1 %vm78_vm0, %v559_v0  ;;  %v80_v2 = vsel %vm78_vm0, %v559_v0, 0  ;;  %v562_v4 = vld [vmem:[%s792_s0] sm:$0xff]   ;;  %v564_v6 = vld [vmem:[%s792_s0 + $0x8] sm:$0xff]   ;;  %v566_v8 = vld [vmem:[%s792_s0 + $0x10] sm:$0xff]   ;;  %v639_v13 = vshrl.u32 %v28_v12, 7 }
   0x3   :  { %522 = vmatpush3.bf16.msra.mxu0 %v80_v2  ;;  %536 = vmatpush3.bf16.msra.mxu1 %v80_v2  ;;  %v563_v5 = vld [vmem:[%s792_s0 + $0x1c] sm:$0xff]   ;;  %v565_v7 = vld [vmem:[%s792_s0 + $0x24] sm:$0xff]   ;;  %v567_v9 = vld [vmem:[%s792_s0 + $0x2c] sm:$0xff]  }
   0x4   :  { %523 = vmatprep.subr.bf16.mxu0 %v560_v1  ;;  %537 = vmatprep.subr.bf16.mxu1 %v560_v1  ;;  %v568_v10 = vld [vmem:[%s792_s0 + $0x18] ss:$0 sps:$4 sm:$0x11]   ;;  %v569_v11 = vld [vmem:[%s792_s0 + $0x34] ss:$0 sps:$4 sm:$0x11]  }
   0x5   :  { %527 = vmatprep.mubr.msk.bf16.mxu0 %vm65_vm1, %v562_v4  ;;  %541 = vmatprep.mubr.msk.bf16.mxu1 %vm65_vm1, %v563_v5  ;;  %v30_v14 = vsub.s32 0, %v639_v13  ;;  %v645_v15 = vld [vmem:[%s793_s2] sm:$0x7] }
   0x7   :  { %524 = vmatpush3.bf16.msra.mxu0 %v560_v1  ;;  %538 = vmatpush3.bf16.msra.mxu1 %v560_v1  ;;  %v31_v16 = vrot.slane %v645_v15, %v30_v14 }
   0x8   :  { %525 = vmatprep.subr.bf16.mxu0 %v561_v3  ;;  %539 = vmatprep.subr.bf16.mxu1 %v561_v3 }
   0xb   :  { %526 = vmatpush3.bf16.msra.mxu0 %v561_v3  ;;  %540 = vmatpush3.bf16.msra.mxu1 %v561_v3 }
   0xe   :  { %528 = vmatmul.mubr.msk.bf16.vlgmr.msra.gmra.mxu0 %vm65_vm1, %v564_v6  ;;  %542 = vmatmul.mubr.msk.bf16.vlgmr.msra.gmra.mxu1 %vm65_vm1, %v565_v7 }
   0xf   :  { %531 = vmatprep.mubr.msk.bf16.mxu0 %vm65_vm1, %v566_v8  ;;  %545 = vmatprep.mubr.msk.bf16.mxu1 %vm65_vm1, %v567_v9 }
  0x16   :  { %532 = vmatmul.mubr.msk.bf16.gmra.mxu0 %vm65_vm1, %v568_v10  ;;  %546 = vmatmul.mubr.msk.bf16.gmra.mxu1 %vm65_vm1, %v569_v11 }
  0xce   :  { %v529_v17 = vpop.f32.mrf.mxu0  ;;  %v543_v18 = vpop.f32.mrf.mxu1 }
  0xcf   :  { %v648_v21 = vadd.f32 %v529_v17, %v31_v16  ;;  %v654_v26 = vadd.f32 %v543_v18, %v31_v16 }
  0xd0   :  { %v116_v19 = vpop.f32.mrf.mxu0  ;;  %v329_v20 = vpop.f32.mrf.mxu1 }
  0xd1   :  { %v650_v22 = vadd.f32 %v116_v19, %v31_v16  ;;  %v652_v23 = vadd.f32 %v329_v20, %v31_v16  ;;  %v166_v31 = vmul.f32 %v648_v21, %v648_v21  ;;  %v378_v40 = vmul.f32 %v654_v26, %v654_v26 }
  0xd2   :  { %v530_v24 = vpop.f32.mrf.mxu0  ;;  %v544_v25 = vpop.f32.mrf.mxu1 }
  0xd3   :  { %v164_v32 = vmul.f32 %v650_v22, %v650_v22  ;;  %v376_v33 = vmul.f32 %v652_v23, %v652_v23  ;;  %v676_v41 = vadd.f32 %v530_v24, %v31_v16  ;;  %v678_v42 = vadd.f32 %v544_v25, %v31_v16 }
  0xd4   :  { %v119_v27 = vpop.f32.mrf.mxu0  ;;  %v332_v28 = vpop.f32.mrf.mxu1 }
  0xd5   :  { %v656_v29 = vadd.f32 %v119_v27, %v31_v16  ;;  %v658_v30 = vadd.f32 %v332_v28, %v31_v16  ;;  %v167_v59 = vmul.f32 %v676_v41, %v676_v41  ;;  %v379_v60 = vmul.f32 %v678_v42, %v678_v42 }
  0xd6   :  { %v533_v34 = vpop.f32.mrf.mxu0  ;;  %v547_v35 = vpop.f32.mrf.mxu1 }
  0xd7   :  { %v146_v36 = vadd.f32 %v656_v29, %v650_v22  ;;  %v165_v37 = vmul.f32 %v656_v29, %v656_v29  ;;  %v359_v38 = vadd.f32 %v658_v30, %v652_v23  ;;  %v377_v39 = vmul.f32 %v658_v30, %v658_v30 }
  0xd8   :  { %v680_v43 = vadd.f32 %v547_v35, %v31_v16  ;;  %v132_v44 = vpop.f32.mrf.mxu0  ;;  %v345_v45 = vpop.f32.mrf.mxu1  ;;  %v684_v50 = vadd.f32 %v533_v34, %v31_v16 }
  0xd9   :  { %v147_v46 = vadd.f32 %v146_v36, %v648_v21  ;;  %v171_v47 = vadd.f32 %v165_v37, %v164_v32  ;;  %v360_v48 = vadd.f32 %v359_v38, %v654_v26  ;;  %v383_v49 = vadd.f32 %v377_v39, %v376_v33 }
  0xda   :  { %v686_v51 = vadd.f32 %v132_v44, %v31_v16  ;;  %v688_v52 = vadd.f32 %v345_v45, %v31_v16  ;;  %v534_v53 = vpop.f32.mrf.mxu0  ;;  %v548_v54 = vpop.f32.mrf.mxu1  ;;  %v364_v0 = vsel %vm151_vm2, %v680_v43, 0.0  ;;  %v152_v6 = vsel %vm151_vm2, %v684_v50, 0.0 }
  0xdb   :  { %v172_v55 = vadd.f32 %v171_v47, %v166_v31  ;;  %v384_v56 = vadd.f32 %v383_v49, %v378_v40  ;;  %v361_v57 = vadd.f32 %v360_v48, %v678_v42  ;;  %v148_v58 = vadd.f32 %v147_v46, %v676_v41 }
  0xdc   :  { %v380_v61 = vmul.f32 %v688_v52, %v688_v52  ;;  %v135_v62 = vpop.f32.mrf.mxu0  ;;  %v348_v63 = vpop.f32.mrf.mxu1  ;;  %v168_v5 = vmul.f32 %v686_v51, %v686_v51  ;;  %v382_v14 = vmul.f32 %v680_v43, %v680_v43  ;;  %v170_v17 = vmul.f32 %v684_v50, %v684_v50 }
  0xdd   :  { %v700_v1 = vadd.f32 %v135_v62, %v31_v16  ;;  %v702_v2 = vadd.f32 %v348_v63, %v31_v16  ;;  %v362_v3 = vadd.f32 %v361_v57, %v688_v52  ;;  %v149_v4 = vadd.f32 %v148_v58, %v686_v51 }
  0xde   :  { %v385_v7 = vadd.f32 %v384_v56, %v379_v60  ;;  %v173_v8 = vadd.f32 %v172_v55, %v167_v59  ;;  %v388_v27 = vsel %vm151_vm2, %v382_v14, 0.0  ;;  %v176_v28 = vsel %vm151_vm2, %v170_v17, 0.0 }
  0xdf   :  { %v169_v9 = vmul.f32 %v700_v1, %v700_v1  ;;  %v381_v10 = vmul.f32 %v702_v2, %v702_v2  ;;  %v363_v11 = vadd.f32 %v362_v3, %v702_v2  ;;  %v150_v12 = vadd.f32 %v149_v4, %v700_v1 }
  0xe0   :  { %v386_v16 = vadd.f32 %v385_v7, %v380_v61  ;;  %v174_v18 = vadd.f32 %v173_v8, %v168_v5 }
  0xe1   :  { %v365_v19 = vadd.f32 %v364_v0, %v363_v11  ;;  %v153_v20 = vadd.f32 %v152_v6, %v150_v12 }
  0xe2   :  { %v387_v24 = vadd.f32 %v386_v16, %v381_v10  ;;  %v175_v25 = vadd.f32 %v174_v18, %v169_v9 }
  0xe3   :  { %366 = vadd.xlane.f32.xlu1 %v365_v19  ;;  %154 = vadd.xlane.f32.xlu0 %v153_v20 }
  0xe4   :  { %v389_v31 = vadd.f32 %v388_v27, %v387_v24  ;;  %v177_v32 = vadd.f32 %v176_v28, %v175_v25 }
  0xe7   :  { %390 = vadd.xlane.f32.xlu1 %v389_v31  ;;  %178 = vadd.xlane.f32.xlu0 %v177_v32 }
 0x16c   :  { %v367_v33 = vpop.xlane.xlu1 %366  ;;  %v155_v34 = vpop.xlane.xlu0 %154 }
 0x16d   :  { %v368_v35 = vrot.slane %v367_v33, 4  ;;  %v156_v36 = vrot.slane %v155_v34, 4 }
 0x16f   :  { %v369_v37 = vadd.f32 %v368_v35, %v367_v33  ;;  %v157_v38 = vadd.f32 %v156_v36, %v155_v34 }
 0x170   :  { %v391_v39 = vpop.xlane.xlu1 %390  ;;  %v179_v40 = vpop.xlane.xlu0 %178 }
 0x171   :  { %v370_v44 = vrot.slane %v369_v37, 2  ;;  %v158_v45 = vrot.slane %v157_v38, 2  ;;  %v392_v46 = vrot.slane %v391_v39, 4  ;;  %v180_v47 = vrot.slane %v179_v40, 4 }
 0x173   :  { %v393_v48 = vadd.f32 %v392_v46, %v391_v39  ;;  %v181_v49 = vadd.f32 %v180_v47, %v179_v40  ;;  %v159_v53 = vadd.f32 %v158_v45, %v157_v38  ;;  %v371_v54 = vadd.f32 %v370_v44, %v369_v37 }
 0x174   :  { %v209_v38 = vsub.s32 1, %v639_v13  ;;  %v220_v47 = vsub.s32 2, %v639_v13 }
 0x175   :  { %v394_v55 = vrot.slane %v393_v48, 2  ;;  %v182_v56 = vrot.slane %v181_v49, 2  ;;  %v160_v57 = vrot.slane %v159_v53, 1  ;;  %v372_v61 = vrot.slane %v371_v54, 1 }
 0x177   :  { %v395_v58 = vadd.f32 %v394_v55, %v393_v48  ;;  %v183_v59 = vadd.f32 %v182_v56, %v181_v49  ;;  %v161_v60 = vadd.f32 %v160_v57, %v159_v53  ;;  %v373_v4 = vadd.f32 %v372_v61, %v371_v54 }
 0x179   :  { %551 = vpush %v161_v60  ;;  %v184_v62 = vrot.slane %v183_v59, 1  ;;  %v396_v63 = vrot.slane %v395_v58, 1 }
 0x17b   :  { %v185_v0 = vadd.f32 %v184_v62, %v183_v59  ;;  %v397_v3 = vadd.f32 %v396_v63, %v395_v58 }
 0x17d   :  { %553 = vpush %v185_v0 }
 0x17e   :  { %555 = vpush %v373_v4 }
 0x17f   :  { %557 = vpush %v397_v3 }
 0x1aa   :  { %s552_s0 = spop %551 }
 0x1ab   :  { %v163_v5 = vstv %s552_s0 }
 0x1ac   :  { %v188_v6 = vmul.f32 0.0025510204, %v163_v5 }
 0x1ae   :  { %v189_v7 = vmul.f32 %v188_v6, %v163_v5  ;;  %s554_s2 = spop %553 }
 0x1af   :  { %v187_v8 = vstv %s554_s2  ;;  %s556_s8 = spop %555 }
 0x1b0   :  { %v190_v9 = vsub.f32 %v187_v8, %v189_v7  ;;  %v375_v10 = vstv %s556_s8  ;;  %s558_s9 = spop %557 }
 0x1b1   :  { %v400_v11 = vmul.f32 0.0025510204, %v375_v10  ;;  %v399_v16 = vstv %s558_s9 }
 0x1b2   :  { %v191_v12 = vmul.f32 0.0025575447, %v190_v9 }
 0x1b3   :  { %v401_v14 = vmul.f32 %v400_v11, %v375_v10 }
 0x1b4   :  { %570 = vrsqrt.f32 %v191_v12  ;;  %vm194_vm3 = vcmp.eq.f32.partialorder %v191_v12, inf  ;;  %v197_v24 = vand.u32 2147483648, %v191_v12  ;;  %vm196_vm4 = vcmp.eq.f32.partialorder %v191_v12, 0.0 }
 0x1b5   :  { %v402_v17 = vsub.f32 %v399_v16, %v401_v14 }
 0x1b7   :  { %v403_v18 = vmul.f32 0.0025575447, %v402_v17 }
 0x1b9   :  { %572 = vrsqrt.f32 %v403_v18  ;;  %vm406_vm5 = vcmp.eq.f32.partialorder %v403_v18, inf  ;;  %v409_v33 = vand.u32 2147483648, %v403_v18  ;;  %vm408_vm6 = vcmp.eq.f32.partialorder %v403_v18, 0.0 }
 0x1c1   :  { %v571_v19 = vpop.eup %570 }
 0x1c2   :  { %v193_v20 = vmul.f32 %v571_v19, %v191_v12 }
 0x1c4   :  { %v195_v25 = vsel %vm194_vm3, %v191_v12, %v193_v20 }
 0x1c5   :  { %v198_v27 = vsel %vm196_vm4, %v197_v24, %v195_v25 }
 0x1c6   :  { %v573_v28 = vpop.eup %572  ;;  %v199_v31 = vadd.f32 1e-05, %v198_v27 }
 0x1c7   :  { %v405_v32 = vmul.f32 %v573_v28, %v403_v18 }
 0x1c8   :  { %574 = vrcp.f32 %v199_v31 }
 0x1c9   :  { %v407_v34 = vsel %vm406_vm5, %v403_v18, %v405_v32 }
 0x1ca   :  { %v410_v35 = vsel %vm408_vm6, %v409_v33, %v407_v34 }
 0x1cb   :  { %v411_v36 = vadd.f32 1e-05, %v410_v35 }
 0x1cd   :  { %576 = vrcp.f32 %v411_v36 }
 0x1d5   :  { %v575_v37 = vpop.eup %574 }
 0x1d6   :  { %v201_v39 = vmul.f32 %v575_v37, %v645_v15 }
 0x1d8   :  { %v202_v40 = vmul.f32 %v201_v39, %v188_v6  ;;  %v210_v44 = vrot.slane %v201_v39, %v209_v38 }
 0x1da   :  { %v577_v45 = vpop.eup %576  ;;  %v204_v46 = vrot.slane %v202_v40, 7  ;;  %v211_v53 = vmul.f32 %v210_v44, %v650_v22  ;;  %v212_v54 = vmul.f32 %v210_v44, %v656_v29  ;;  %v213_v55 = vmul.f32 %v210_v44, %v648_v21 }
 0x1db   :  { %v413_v49 = vmul.f32 %v577_v45, %v645_v15  ;;  %v214_v56 = vmul.f32 %v210_v44, %v676_v41  ;;  %v215_v59 = vmul.f32 %v210_v44, %v686_v51  ;;  %v216_v60 = vmul.f32 %v210_v44, %v700_v1 }
 0x1dc   :  { %v206_v48 = vsub.f32 %v645_v15, %v204_v46  ;;  %v217_v13 = vmul.f32 %v210_v44, %v684_v50 }
 0x1dd   :  { %v414_v58 = vmul.f32 %v413_v49, %v400_v11  ;;  %v422_v61 = vrot.slane %v413_v49, %v209_v38 }
 0x1de   :  { %v221_v57 = vrot.slane %v206_v48, %v220_v47 }
 0x1df   :  { %v416_v5 = vrot.slane %v414_v58, 7  ;;  %v423_v17 = vmul.f32 %v422_v61, %v652_v23  ;;  %v424_v18 = vmul.f32 %v422_v61, %v658_v30  ;;  %v425_v19 = vmul.f32 %v422_v61, %v654_v26 }
 0x1e0   :  { %v222_v62 = vadd.f32 %v221_v57, %v211_v53  ;;  %v223_v63 = vadd.f32 %v221_v57, %v212_v54  ;;  %v224_v0 = vadd.f32 %v221_v57, %v213_v55  ;;  %v225_v3 = vadd.f32 %v221_v57, %v214_v56 }
 0x1e1   :  { %v226_v22 = vadd.f32 %v221_v57, %v215_v59  ;;  %v227_v4 = vadd.f32 %v221_v57, %v216_v60  ;;  %v228_v29 = vadd.f32 %v221_v57, %v217_v13  ;;  %v418_v1 = vsub.f32 %v645_v15, %v416_v5 }
 0x1e2   :  { %vm229_vm7 = vcmp.gt.f32.partialorder %v222_v62, 0.0  ;;  %vm230_vm8 = vcmp.gt.f32.partialorder %v223_v63, 0.0  ;;  %vm231_vm9 = vcmp.gt.f32.partialorder %v224_v0, 0.0  ;;  %vm232_vm10 = vcmp.gt.f32.partialorder %v225_v3, 0.0 }
 0x1e3   :  { %vm233_vm11 = vcmp.gt.f32.partialorder %v226_v22, 0.0  ;;  %vm234_vm12 = vcmp.gt.f32.partialorder %v227_v4, 0.0  ;;  %vm235_vm13 = vcmp.gt.f32.partialorder %v228_v29, 0.0  ;;  %v236_v21 = vmul.f32 0.01, %v222_v62 }
 0x1e4   :  { %v237_v41 = vmul.f32 0.01, %v223_v63  ;;  %v238_v51 = vmul.f32 0.01, %v224_v0  ;;  %v239_v50 = vmul.f32 0.01, %v225_v3  ;;  %v426_v20 = vmul.f32 %v422_v61, %v678_v42 }
 0x1e5   :  { %v240_v6 = vmul.f32 0.01, %v226_v22  ;;  %v241_v7 = vmul.f32 0.01, %v227_v4  ;;  %v242_v8 = vmul.f32 0.01, %v228_v29  ;;  %v243_v9 = vsel %vm229_vm7, %v222_v62, %v236_v21 }
 0x1e6   :  { %v244_v10 = vsel %vm230_vm8, %v223_v63, %v237_v41  ;;  %v245_v11 = vsel %vm231_vm9, %v224_v0, %v238_v51  ;;  %v246_v12 = vsel %vm232_vm10, %v225_v3, %v239_v50  ;;  %250 = vst [vmem:[%s794_s3] sm:$0xff] %v243_v9  ;;  %v433_v24 = vrot.slane %v418_v1, %v220_v47 }
 0x1e7   :  { %v247_v14 = vsel %vm233_vm11, %v226_v22, %v240_v6  ;;  %v248_v16 = vsel %vm234_vm12, %v227_v4, %v241_v7  ;;  %v249_v15 = vsel %vm235_vm13, %v228_v29, %v242_v8  ;;  %251 = vst [vmem:[%s794_s3 + $0x8] sm:$0xff] %v244_v10  ;;  %252 = vst [vmem:[%s794_s3 + $0x10] sm:$0xff] %v245_v11 }
 0x1e8   :  { %253 = vst [vmem:[%s794_s3 + $0x18] sm:$0xff] %v246_v12  ;;  %254 = vst [vmem:[%s794_s3 + $0x20] sm:$0xff] %v247_v14  ;;  %v427_v25 = vmul.f32 %v422_v61, %v688_v52  ;;  %v428_v27 = vmul.f32 %v422_v61, %v702_v2  ;;  %v429_v28 = vmul.f32 %v422_v61, %v680_v43 }
 0x1e9   :  { %255 = vst [vmem:[%s794_s3 + $0x28] sm:$0xff] %v248_v16  ;;  %256 = vst [vmem:[%s794_s3 + $0x30] sm:$0x1] %v249_v15  ;;  %v434_v31 = vadd.f32 %v433_v24, %v423_v17  ;;  %v435_v32 = vadd.f32 %v433_v24, %v424_v18  ;;  %v436_v33 = vadd.f32 %v433_v24, %v425_v19 }
 0x1ea   :  { %v437_v34 = vadd.f32 %v433_v24, %v426_v20  ;;  %v438_v35 = vadd.f32 %v433_v24, %v427_v25  ;;  %v439_v36 = vadd.f32 %v433_v24, %v428_v27  ;;  %v440_v23 = vadd.f32 %v433_v24, %v429_v28 }
 0x1eb   :  { %vm441_vm14 = vcmp.gt.f32.partialorder %v434_v31, 0.0  ;;  %vm442_vm15 = vcmp.gt.f32.partialorder %v435_v32, 0.0  ;;  %vm443_vm0 = vcmp.gt.f32.partialorder %v436_v33, 0.0  ;;  %v448_v26 = vmul.f32 0.01, %v434_v31 }
 0x1ec   :  { %vm444_vm1 = vcmp.gt.f32.partialorder %v437_v34, 0.0  ;;  %vm445_vm2 = vcmp.gt.f32.partialorder %v438_v35, 0.0  ;;  %vm446_vm3 = vcmp.gt.f32.partialorder %v439_v36, 0.0  ;;  %vm447_vm4 = vcmp.gt.f32.partialorder %v440_v23, 0.0 }
 0x1ed   :  { %v449_v30 = vmul.f32 0.01, %v435_v32  ;;  %v450_v42 = vmul.f32 0.01, %v436_v33  ;;  %v451_v52 = vmul.f32 0.01, %v437_v34  ;;  %v455_v38 = vsel %vm441_vm14, %v434_v31, %v448_v26 }
 0x1ee   :  { %v452_v2 = vmul.f32 0.01, %v438_v35  ;;  %v453_v43 = vmul.f32 0.01, %v439_v36  ;;  %v454_v37 = vmul.f32 0.01, %v440_v23 }
 0x1ef   :  { %v456_v39 = vsel %vm442_vm15, %v435_v32, %v449_v30  ;;  %v457_v40 = vsel %vm443_vm0, %v436_v33, %v450_v42  ;;  %v458_v44 = vsel %vm444_vm1, %v437_v34, %v451_v52  ;;  %500 = vst [vmem:[%s794_s3 + $0x38] sm:$0xff] %v455_v38 }
 0x1f0   :  { %v459_v45 = vsel %vm445_vm2, %v438_v35, %v452_v2  ;;  %v460_v46 = vsel %vm446_vm3, %v439_v36, %v453_v43  ;;  %v461_v47 = vsel %vm447_vm4, %v440_v23, %v454_v37  ;;  %501 = vst [vmem:[%s794_s3 + $0x40] sm:$0xff] %v456_v39  ;;  %502 = vst [vmem:[%s794_s3 + $0x48] sm:$0xff] %v457_v40 }
 0x1f1   :  { %503 = vst [vmem:[%s794_s3 + $0x50] sm:$0xff] %v458_v44  ;;  %504 = vst [vmem:[%s794_s3 + $0x58] sm:$0xff] %v459_v45 }
 0x1f2   :  { %505 = vst [vmem:[%s794_s3 + $0x60] sm:$0xff] %v460_v46  ;;  %506 = vst [vmem:[%s794_s3 + $0x68] sm:$0x1] %v461_v47 }

</bundles_post_ra>
